<compile_context>
chip_gen: v5e
topology: v5e:2x2
jax: 0.10.0
libtpu: 0.0.40
codegen_flags: <defaults>
</compile_context>

<pallas_src>
import jax
import jax.numpy as jnp
from jax import lax
from jax.experimental import pallas as pl
from jax.experimental.pallas import tpu as pltpu


# ----------------------------------------------------------------------------
# Helpers
# ----------------------------------------------------------------------------
def _sigmoid(x):
    # 1 / (1 + exp(-x)); exp on the EUP, reciprocal off the VALU path.
    return pl.reciprocal(1.0 + jnp.exp(-x))


def _vmem_budget_bytes():
    try:
        cap = int(pltpu.get_tpu_info().vmem_capacity_bytes)
    except Exception:
        cap = 64 * 1024 * 1024            # conservative: v7x per-TC VMEM
    cap = max(cap, 16 * 1024 * 1024)
    # Leave headroom for compiler scratch / double-buffer bookkeeping.
    return min((3 * cap) // 4, 96 * 1024 * 1024)


def _pick_batch_block(B, per_batch_bytes):
    """Fold batch elements per grid step (amortize step overhead on v5e/v6e)
    while keeping >= 2 grid steps when B >= 2 (v7x dual TensorCore)."""
    target = 4 * 1024 * 1024              # ~4 MiB streamed per grid step
    bt = max(1, min(B, target // max(per_batch_bytes, 1)))
    if B >= 2:
        bt = max(1, min(bt, B // 2))
    while B % bt:
        bt -= 1
    return bt


def _largest_divisor(n, cap, step):
    """Largest multiple of `step` that divides n and is <= cap (0 if none)."""
    best = 0
    d = step
    lim = min(n, cap)
    while d <= lim:
        if n % d == 0:
            best = d
        d += step
    return best


# ----------------------------------------------------------------------------
# Fused single-pass kernel (full HW slabs resident in VMEM).
#   en_ref   : (Bt, c_en, HW)     de_ref  : (Bt, c_de, HW)
#   gate_ref : (Bt, c_de, HW)     out_ref : (Bt, c_de, HW)
# ----------------------------------------------------------------------------
def _fused_kernel(en_ref, de_ref, gate_ref, out_ref):
    en = en_ref[...]
    de = de_ref[...]

    # energy[b, i, j] = sum_n de[b, i, n] * en[b, j, n]  (NT form, like q.k^T)
    energy = lax.dot_general(
        de, en, (((2,), (2,)), ((0,), (0,))),
        preferred_element_type=jnp.float32)              # (Bt, c_de, c_en) f32

    # softmax(rowmax(E) - E) == softmax(-E); stabilized with rowmin(E).
    p = jnp.exp(jnp.min(energy, axis=-1, keepdims=True) - energy)
    attn = p * pl.reciprocal(jnp.sum(p, axis=-1, keepdims=True))

    att_en = lax.dot_general(
        attn.astype(en.dtype), en, (((2,), (1,)), ((0,), (0,))),
        preferred_element_type=jnp.float32)              # (Bt, c_de, HW) f32

    gate = gate_ref[...].astype(jnp.float32)
    out_ref[...] = (att_en * _sigmoid(gate)).astype(out_ref.dtype)


# ----------------------------------------------------------------------------
# Tiled pass 1: accumulate energy over HW tiles, softmax at the last tile.
#   en_ref : (1, c_en, hw_t)   de_ref : (1, c_de, hw_t)
#   attn_ref (out, resident across hw axis) : (1, c_de, c_en) f32
#   acc_ref (scratch) : (1, c_de, c_en) f32
# ----------------------------------------------------------------------------
def _energy_softmax_kernel(en_ref, de_ref, attn_ref, acc_ref):
    hw = pl.program_id(1)

    @pl.when(hw == 0)
    def _():
        acc_ref[...] = jnp.zeros_like(acc_ref)

    acc_ref[...] += lax.dot_general(
        de_ref[...], en_ref[...], (((2,), (2,)), ((0,), (0,))),
        preferred_element_type=jnp.float32)

    @pl.when(hw == pl.num_programs(1) - 1)
    def _():
        e = acc_ref[...]
        p = jnp.exp(jnp.min(e, axis=-1, keepdims=True) - e)
        attn_ref[...] = p * pl.reciprocal(jnp.sum(p, axis=-1, keepdims=True))


# ----------------------------------------------------------------------------
# Tiled pass 2: out = (attn @ en) * sigmoid(gate), streamed per HW tile.
#   attn_ref : (1, c_de, c_en)   en_ref  : (1, c_en, hw_t)
#   gate_ref : (1, c_de, hw_t)   out_ref : (1, c_de, hw_t)
# ----------------------------------------------------------------------------
def _apply_kernel(attn_ref, en_ref, gate_ref, out_ref):
    en = en_ref[...]
    att_en = lax.dot_general(
        attn_ref[...].astype(en.dtype), en, (((2,), (1,)), ((0,), (0,))),
        preferred_element_type=jnp.float32)
    gate = gate_ref[...].astype(jnp.float32)
    out_ref[...] = (att_en * _sigmoid(gate)).astype(out_ref.dtype)


# ----------------------------------------------------------------------------
# Wrapper
# ----------------------------------------------------------------------------
def out_forward(input_en, input_de, gate_map, *, force_tiled=False, hw_tile=None):
    B, c_en, H, W = input_en.shape
    c_de = input_de.shape[1]
    HW = H * W

    dtype = jnp.result_type(input_en.dtype, input_de.dtype, gate_map.dtype)
    # NCHW <-> (B, C, HW) is a pure reshape (no transpose, no copy). No f32
    # up-cast: bf16/f32 inputs flow through in their native dtype.
    en = input_en.reshape(B, c_en, HW).astype(dtype)
    de = input_de.reshape(B, c_de, HW).astype(dtype)
    gate = gate_map.reshape(B, c_de, HW).astype(dtype)
    itemsize = jnp.dtype(dtype).itemsize

    vmem_limit = _vmem_budget_bytes()

    per_batch_stream = (c_en + 3 * c_de) * HW * itemsize   # en + de + gate + out
    bt = _pick_batch_block(B, per_batch_stream)
    fused_need = 2 * bt * per_batch_stream + bt * c_de * c_en * 4
    use_fused = (not force_tiled) and fused_need <= int(0.8 * vmem_limit)

    total_flops = 4 * B * c_de * c_en * HW
    total_bytes = B * per_batch_stream

    if use_fused:
        out = pl.pallas_call(
            _fused_kernel,
            out_shape=jax.ShapeDtypeStruct((B, c_de, HW), dtype),
            grid=(B // bt,),
            in_specs=[
                pl.BlockSpec((bt, c_en, HW), lambda b: (b, 0, 0)),
                pl.BlockSpec((bt, c_de, HW), lambda b: (b, 0, 0)),
                pl.BlockSpec((bt, c_de, HW), lambda b: (b, 0, 0)),
            ],
            out_specs=pl.BlockSpec((bt, c_de, HW), lambda b: (b, 0, 0)),
            compiler_params=pltpu.CompilerParams(
                dimension_semantics=("parallel",),
                vmem_limit_bytes=vmem_limit),
            cost_estimate=pl.CostEstimate(
                flops=total_flops,
                transcendentals=B * c_de * (c_en + HW),
                bytes_accessed=total_bytes),
        )(en, de, gate)
        return out.reshape(B, c_de, H, W)

    # ------------------- HW-tiled two-pass (production / v7x) path ----------
    if hw_tile is None:
        cap_elems = max(128, int(0.8 * vmem_limit) //
                        (2 * (c_en + 2 * c_de) * itemsize))
        hw_tile = (_largest_divisor(HW, cap_elems, 128)
                   or _largest_divisor(HW, cap_elems, 1)
                   or HW)
    assert HW % hw_tile == 0, "hw_tile must divide H*W"
    n_hw = HW // hw_tile

    # Pass 1: energy accumulation (HW axis last, "arbitrary") + softmax.
    attn = pl.pallas_call(
        _energy_softmax_kernel,
        out_shape=jax.ShapeDtypeStruct((B, c_de, c_en), jnp.float32),
        grid=(B, n_hw),
        in_specs=[
            pl.BlockSpec((1, c_en, hw_tile), lambda b, h: (b, 0, h)),
            pl.BlockSpec((1, c_de, hw_tile), lambda b, h: (b, 0, h)),
        ],
        out_specs=pl.BlockSpec((1, c_de, c_en), lambda b, h: (b, 0, 0)),
        scratch_shapes=[pltpu.VMEM((1, c_de, c_en), jnp.float32)],
        compiler_params=pltpu.CompilerParams(
            dimension_semantics=("parallel", "arbitrary"),
            vmem_limit_bytes=vmem_limit),
        cost_estimate=pl.CostEstimate(
            flops=2 * B * c_de * c_en * HW,
            transcendentals=B * c_de * c_en,
            bytes_accessed=B * (c_en + c_de) * HW * itemsize),
    )(en, de)

    # Pass 2: stream en/gate tiles, lane-dense output stores.
    out = pl.pallas_call(
        _apply_kernel,
        out_shape=jax.ShapeDtypeStruct((B, c_de, HW), dtype),
        grid=(B, n_hw),
        in_specs=[
            pl.BlockSpec((1, c_de, c_en), lambda b, h: (b, 0, 0)),
            pl.BlockSpec((1, c_en, hw_tile), lambda b, h: (b, 0, h)),
            pl.BlockSpec((1, c_de, hw_tile), lambda b, h: (b, 0, h)),
        ],
        out_specs=pl.BlockSpec((1, c_de, hw_tile), lambda b, h: (b, 0, h)),
        compiler_params=pltpu.CompilerParams(
            dimension_semantics=("parallel", "parallel"),
            vmem_limit_bytes=vmem_limit),
        cost_estimate=pl.CostEstimate(
            flops=2 * B * c_de * c_en * HW,
            transcendentals=B * c_de * HW,
            bytes_accessed=B * (c_en + 2 * c_de) * HW * itemsize),
    )(attn, en, gate)

    return out.reshape(B, c_de, H, W)


# ----------------------------------------------------------------------------
# Pure-JAX reference (mirrors the PyTorch module exactly).
# ----------------------------------------------------------------------------
def out_reference(input_en, input_de, gate_map):
    B, c_en, H, W = input_en.shape
    c_de = input_de.shape[1]
    HW = H * W
    en = input_en.reshape(B, c_en, HW)
    de = input_de.reshape(B, c_de, HW)
    energy = jnp.einsum('bdn,ben->bde', de, en)
    energy_new = jnp.max(energy, axis=-1, keepdims=True) - energy
    attn = jax.nn.softmax(energy_new, axis=-1)
    att_en = jnp.einsum('bde,ben->bdn', attn, en).reshape(B, c_de, H, W)
    return att_en * jax.nn.sigmoid(gate_map)


if __name__ == "__main__":
    key = jax.random.PRNGKey(0)
    B, c_en, c_de, H, W = 2, 16, 8, 16, 16         # HW = 256 (2 x 128 lanes)
    k0, k1, k2 = jax.random.split(key, 3)

    input_en = jax.random.normal(k0, (B, c_en, H, W), jnp.float32)
    input_de = jax.random.normal(k1, (B, c_de, H, W), jnp.float32)
    gate_map = jax.random.normal(k2, (B, c_de, H, W), jnp.float32)

    ref = out_reference(input_en, input_de, gate_map)

    # Fused full-slab path (selected automatically at this size).
    out = jax.block_until_ready(out_forward(input_en, input_de, gate_map))
    assert out.shape == (B, c_de, H, W)
    assert out.dtype == input_de.dtype
    assert jnp.allclose(out, ref, rtol=1e-4, atol=1e-4), "fused path mismatch"

    # HW-tiled two-pass path (the production / v7x fallback), forced here.
    out_t = jax.block_until_ready(
        out_forward(input_en, input_de, gate_map, force_tiled=True, hw_tile=128))
    assert jnp.allclose(out_t, ref, rtol=1e-4, atol=1e-4), "tiled path mismatch"

    print("KERNEL_OK")
</pallas_src>

<mosaic_0001>
module attributes {stable_mosaic.version = 11 : i64} {
  func.func @_fused_kernel(%arg0: i32, %arg1: memref<1x16x256xf32, #tpu.memory_space<vmem>>, %arg2: memref<1x8x256xf32, #tpu.memory_space<vmem>>, %arg3: memref<1x8x256xf32, #tpu.memory_space<vmem>>, %arg4: memref<1x8x256xf32, #tpu.memory_space<vmem>>) attributes {dimension_semantics = [#tpu.dimension_semantics<parallel>], iteration_bounds = array<i64: 2>, scalar_prefetch = 0 : i64, scratch_operands = 0 : i64, tpu.core_type = #tpu.core_type<tc>, window_params = [{transform_indices = @transform_0, window_bounds = array<i64: 1, 16, 256>}, {transform_indices = @transform_1, window_bounds = array<i64: 1, 8, 256>}, {transform_indices = @transform_2, window_bounds = array<i64: 1, 8, 256>}, {transform_indices = @transform_3, window_bounds = array<i64: 1, 8, 256>}]} {
    %c0 = arith.constant 0 : index
    %c0_0 = arith.constant 0 : index
    %c0_1 = arith.constant 0 : index
    %0 = vector.load %arg1[%c0, %c0_0, %c0_1] : memref<1x16x256xf32, #tpu.memory_space<vmem>>, vector<1x16x256xf32>
    %c0_2 = arith.constant 0 : index
    %c0_3 = arith.constant 0 : index
    %c0_4 = arith.constant 0 : index
    %1 = vector.load %arg2[%c0_2, %c0_3, %c0_4] : memref<1x8x256xf32, #tpu.memory_space<vmem>>, vector<1x8x256xf32>
    %cst = arith.constant dense<0.000000e+00> : vector<1x8x16xf32>
    %2 = tpu.matmul %1, %0, %cst {dimension_numbers = #tpu.dot_dimension_numbers<[2], [2], [1], [1], [0, 0, 0, 1, 1, 1], [0], [0]>} : vector<1x8x256xf32>, vector<1x16x256xf32>, vector<1x8x16xf32> -> vector<1x8x16xf32>
    %cst_5 = arith.constant dense<0x7F800000> : vector<1x8xf32>
    %3 = vector.multi_reduction <minimumf>, %2, %cst_5 [2] : vector<1x8x16xf32> to vector<1x8xf32>
    %4 = vector.shape_cast %3 : vector<1x8xf32> to vector<1x8x1xf32>
    %5 = vector.broadcast %4 : vector<1x8x1xf32> to vector<1x8x16xf32>
    %6 = arith.subf %5, %2 : vector<1x8x16xf32>
    %7 = math.exp %6 : vector<1x8x16xf32>
    %cst_6 = arith.constant dense<0.000000e+00> : vector<1x8xf32>
    %8 = vector.multi_reduction <add>, %7, %cst_6 [2] : vector<1x8x16xf32> to vector<1x8xf32>
    %9 = vector.shape_cast %8 : vector<1x8xf32> to vector<1x8x1xf32>
    %10 = tpu.reciprocal %9 : vector<1x8x1xf32> -> vector<1x8x1xf32>
    %11 = vector.broadcast %10 : vector<1x8x1xf32> to vector<1x8x16xf32>
    %12 = arith.mulf %7, %11 : vector<1x8x16xf32>
    %cst_7 = arith.constant dense<0.000000e+00> : vector<1x8x256xf32>
    %13 = tpu.matmul %12, %0, %cst_7 {dimension_numbers = #tpu.dot_dimension_numbers<[2], [1], [1], [2], [0, 0, 0, 1, 1, 2], [0], [0]>} : vector<1x8x16xf32>, vector<1x16x256xf32>, vector<1x8x256xf32> -> vector<1x8x256xf32>
    %c0_8 = arith.constant 0 : index
    %c0_9 = arith.constant 0 : index
    %c0_10 = arith.constant 0 : index
    %14 = vector.load %arg3[%c0_8, %c0_9, %c0_10] : memref<1x8x256xf32, #tpu.memory_space<vmem>>, vector<1x8x256xf32>
    %cst_11 = arith.constant 0.000000e+00 : f32
    %15 = vector.broadcast %cst_11 : f32 to vector<1x8x256xf32>
    %16 = arith.subf %15, %14 : vector<1x8x256xf32>
    %17 = math.exp %16 : vector<1x8x256xf32>
    %cst_12 = arith.constant 1.000000e+00 : f32
    %18 = vector.broadcast %cst_12 : f32 to vector<1x8x256xf32>
    %19 = arith.addf %18, %17 : vector<1x8x256xf32>
    %20 = tpu.reciprocal %19 : vector<1x8x256xf32> -> vector<1x8x256xf32>
    %21 = arith.mulf %13, %20 : vector<1x8x256xf32>
    %c0_13 = arith.constant 0 : index
    %c0_14 = arith.constant 0 : index
    %c0_15 = arith.constant 0 : index
    %22 = vector.load %arg4[%c0_13, %c0_14, %c0_15] : memref<1x8x256xf32, #tpu.memory_space<vmem>>, vector<1x8x256xf32>
    tpu.vector_store %arg4[%c0_13, %c0_14, %c0_15], %21 {strides = array<i32>} : memref<1x8x256xf32, #tpu.memory_space<vmem>>, vector<1x8x256xf32>,
    return
  }
  func.func @transform_0(%arg0: i32) -> (i32, i32, i32) {
    %c0_i32 = arith.constant 0 : i32
    %c0_i32_0 = arith.constant 0 : i32
    %c0_i32_1 = arith.constant 0 : i32
    return %arg0, %c0_i32, %c0_i32_0 : i32, i32, i32
  }
  func.func @transform_1(%arg0: i32) -> (i32, i32, i32) {
    %c0_i32 = arith.constant 0 : i32
    %c0_i32_0 = arith.constant 0 : i32
    %c0_i32_1 = arith.constant 0 : i32
    return %arg0, %c0_i32, %c0_i32_0 : i32, i32, i32
  }
  func.func @transform_2(%arg0: i32) -> (i32, i32, i32) {
    %c0_i32 = arith.constant 0 : i32
    %c0_i32_0 = arith.constant 0 : i32
    %c0_i32_1 = arith.constant 0 : i32
    return %arg0, %c0_i32, %c0_i32_0 : i32, i32, i32
  }
  func.func @transform_3(%arg0: i32) -> (i32, i32, i32) {
    %c0_i32 = arith.constant 0 : i32
    %c0_i32_0 = arith.constant 0 : i32
    %c0_i32_1 = arith.constant 0 : i32
    return %arg0, %c0_i32, %c0_i32_0 : i32, i32, i32
  }
}

</mosaic_0001>

<bundles_post_ra>
// kernel: tpu_custom_call.1
= control target key start
LH: loop header
LB: loop body
LE: loop exit
PB: predicated region body
PF: predicated region fallthrough
CT: control target
= control target key end

     0   :  { %s1023_s0 = inlined_call_operand.hbm [shape: f32[2,16,256], index: 0, kind: input, shape index: {}]   ;;  %s1024_s1 = inlined_call_operand.hbm [shape: f32[2,8,256], index: 1, kind: input, shape index: {}]   ;;  %s1025_s2 = inlined_call_operand.hbm [shape: f32[2,8,256], index: 2, kind: input, shape index: {}]   ;;  %s1026_s3 = inlined_call_operand.hbm [shape: f32[2,8,256], index: 3, kind: output, shape index: {}]  }
   0x1   :  { %1028 = sst [smem:[#allocation13_spill]] %s1023_s0 }
   0x2   :  { %1029 = sst [smem:[#allocation14_spill]] %s1024_s1 }
   0x3   :  { %8 = vsyncpa [#allocation3], 0 }
   0x4   :  { %10 = vsyncpa [#allocation3 + $0x1], 0 }
   0x5   :  { %11 = vsyncpa [#allocation6], 0 }
   0x6   :  { %13 = vsyncpa [#allocation6 + $0x1], 0 }
   0x7   :  { %14 = vsyncpa [#allocation4], 0 }
   0x8   :  { %16 = vsyncpa [#allocation4 + $0x1], 0  ;;  %s836_s12 = smov 0   ;;  %s838_s13 = smov 0  }
   0x9   :  { %s840_s14 = smov 0   ;;  %s842_s15 = smov 0  }
   0xa LB: > { %s857_s16 = sadd.s32 4294967295, %s812_s15   ;;  %s554_s17 = sadd.s32 4294967294, %s812_s15   ;;  %s812_s15 = sphi %s842_s15, %s1043_s15   ;;  %s808_s14 = sphi %s840_s14, %s1042_s14   ;;  %s804_s13 = sphi %s838_s13, %s1041_s13   ;;  %s800_s12 = sphi %s836_s12, %s1040_s12  }
   0xb   : > { %s861_s18 = sadd.s32 1, %s812_s15   ;;  %s29_s19 = sadd.s32 1, %s808_s14 }
   0xc   : > { %s26_s20 = ssub.s32 %s812_s15, %s861_s18  ;;  %p36_p0 = scmp.ne.s32.totalorder %s808_s14, %s804_s13 }
   0xd   : > { %p27_p1 = scmp.eq.s32.totalorder %s26_s20, 0  ;;  %p37_p2 = scmp.eq.s32.totalorder %s812_s15, 0 }
   0xe   : > { %p42_p3 = scmp.ne.s32.totalorder %s804_s13, %s800_s12  ;;  %p43_p4 = scmp.eq.s32.totalorder %s857_s16, 0 }
   0xf   : > { %s873_s21 = scalar_select %p27_p1, %s808_s14, %s29_s19  }
  0x10   : > { %p38_p5 = por %p37_p2, %p36_p0  ;;  %p875_p6 = por %p43_p4, %p42_p3 }
  0x11   : > { %1030 = sst [smem:[#allocation12_spill]] %s873_s21  ;;  %p118_p7 = scmp.eq.s32.totalorder %s857_s16, 1 }
  0x12   : > { %p124_p8 = scmp.eq.s32.totalorder %s554_s17, 1  ;;  %p556_p9 = scmp.ge.s32.totalorder %s812_s15, 2 }
  0x13   : > { %p604_p10 = scmp.lt.s32.totalorder %s812_s15, 2  ;;  %p882_p11 = por %p118_p7, %p36_p0 }
  0x14   : > { %p886_p12 = por %p124_p8, %p42_p3  ;;  %s891_s25 = sand.u32 1, %s808_s14  }
  0x15   : > { %p893_p13 = pnand %p604_p10, %p38_p5  ;;  %s166_s27 = sand.u32 1, %s812_s15  }
  0x16   : > { %s1027_s28 = sshll.u32 %s891_s25, 4  ;;  %s579_s29 = sshll.u32 %s812_s15, 4 }
  0x17   : > { %s1035_s1 = sld [smem:[#allocation14_spill]]  ;;  %s170_s6 = scalar_lea.vmem [#allocation5], %s1027_s28 }
  0x18   : > { %s179_s7 = sshll.u32 %s170_s6, 4  ;;  %s905_s9 = scalar_lea.sflag [#allocation6], %s166_s27  ;;  %s180_s7 = int_to_ptr.vmem [resolvable:$true] %s179_s7 }
  0x19   : > { %p656_p1 = pneg %p893_p13 }
  0x1d   : > { %s175_s5 = scalar_lea.hbm %s1035_s1, %s579_s29  ;;  %s659_s20 = scalar_lea.hbm %s1035_s1, 32 }
  0x1e   : > { %s177_s8 = sshll.u32 %s175_s5, 4  ;;  %s178_s8 = int_to_ptr.hbm [resolvable:$true] %s177_s8 }
  0x1f   : > { %s652_s10 = sshra.s32 %s178_s8, 4  ;;  %s653_s10 = int_to_ptr.hbm [resolvable:$true] %s652_s10 }
  0x20   : > { %s654_s11 = scalar_lea.hbm %s653_s10, 16  ;;  %p660_p4 = scmp.lt.s32.totalorder %s653_s10, %s1035_s1 }
  0x21   : > { %p655_p0 = scmp.ne.s32.totalorder %s653_s10, %s654_s11  ;;  %p661_p5 = scmp.lt.s32.totalorder %s659_s20, %s654_s11 }
  0x23   : > { %p657_p2 = pnand %p656_p1, %p655_p0  ;;  %p662_p7 = por %p661_p5, %p660_p4 }
  0x25   : > { %p658_p3 = pneg %p657_p2 }
  0x27   : > { %p663_p8 = pnand %p662_p7, %p658_p3 }
  0x29   : > { %666 = shalt.err (!%p663_p8)
}
  0x2a   : > { %596 = dma.hbm_to_vmem [thread:$0]  (!%p893_p13), %s178_s8, 256, %s180_s7, %s905_s9  }
  0x2b   : > { %s924_s6 = scalar_lea.hbm %s1025_s2, %s579_s29  ;;  %p566_p10 = scmp.ge.s32.totalorder %s812_s15, 1 }
  0x2c   : > { %p204_p0 = scmp.lt.s32.totalorder %s812_s15, 3  ;;  %s557_s10 = sshll.u32 %s891_s25, 5 }
  0x2d   : > { %s578_s11 = sshll.u32 %s812_s15, 5  ;;  %s1037_s0 = sld [smem:[#allocation13_spill]] }
  0x2e   : > { %p930_p2 = pnand %p566_p10, %p204_p0  ;;  %s148_s7 = scalar_lea.vmem [#allocation2], %s557_s10 }
  0x2f   : > { %s156_s8 = sshll.u32 %s148_s7, 4  ;;  %s197_s29 = sshll.u32 %s924_s6, 4  ;;  %s157_s8 = int_to_ptr.vmem [resolvable:$true] %s156_s8  ;;  %s198_s29 = int_to_ptr.hbm [resolvable:$true] %s197_s29 }
  0x30   : > { %s145_s27 = scalar_lea.sflag [#allocation3], %s891_s25 }
  0x33   : > { %s153_s30 = scalar_lea.hbm %s1037_s0, %s578_s11  ;;  %s689_s19 = scalar_lea.hbm %s1037_s0, 64 }
  0x34   : > { %s154_s4 = sshll.u32 %s153_s30, 4  ;;  %s155_s4 = int_to_ptr.hbm [resolvable:$true] %s154_s4 }
  0x35   : > { %s682_s5 = sshra.s32 %s155_s4, 4  ;;  %s683_s5 = int_to_ptr.hbm [resolvable:$true] %s682_s5 }
  0x36   : > { %s684_s28 = scalar_lea.hbm %s683_s5, 32  ;;  %p690_p7 = scmp.lt.s32.totalorder %s683_s5, %s1037_s0 }
  0x37   : > { %p685_p3 = scmp.ne.s32.totalorder %s683_s5, %s684_s28  ;;  %p691_p8 = scmp.lt.s32.totalorder %s689_s19, %s684_s28 }
  0x39   : > { %p687_p4 = pnand %p685_p3, %p656_p1  ;;  %p692_p10 = por %p691_p8, %p690_p7 }
  0x3b   : > { %p688_p5 = pneg %p687_p4 }
  0x3d   : > { %p693_p0 = pnand %p692_p10, %p688_p5 }
  0x3f   : > { %696 = shalt.err (!%p693_p0)
}
  0x40   : > { %s814_s6 = smov 256   ;;  %s815_s20 = smov 16  }
  0x41   : > { %593 = dma.hbm_to_vmem [thread:$0]  (!%p893_p13), %s155_s4, 512, %s157_s8, %s145_s27, %s814_s6, %s814_s6, %s815_s20  }
  0x42   : > { %s1038_s30 = sshll.u32 %s891_s25, 4  ;;  %s712_s21 = sshra.s32 %s198_s29, 4  ;;  %s713_s21 = int_to_ptr.hbm [resolvable:$true] %s712_s21 }
  0x43   : > { %s190_s7 = scalar_lea.vmem [#allocation7], %s1038_s30  ;;  %s714_s11 = scalar_lea.hbm %s713_s21, 16 }
  0x44   : > { %s199_s1 = sshll.u32 %s190_s7, 4  ;;  %p715_p3 = scmp.ne.s32.totalorder %s713_s21, %s714_s11  ;;  %s200_s1 = int_to_ptr.vmem [resolvable:$true] %s199_s1 }
  0x45   : > { %s719_s19 = scalar_lea.hbm %s1025_s2, 32  ;;  %p720_p7 = scmp.lt.s32.totalorder %s713_s21, %s1025_s2 }
  0x46   : > { %p717_p4 = pnand %p715_p3, %p656_p1  ;;  %p721_p8 = scmp.lt.s32.totalorder %s719_s19, %s714_s11 }
  0x48   : > { %p718_p5 = pneg %p717_p4  ;;  %p722_p10 = por %p721_p8, %p720_p7 }
  0x4a   : > { %p723_p0 = pnand %p722_p10, %p718_p5 }
  0x4c   : > { %726 = shalt.err (!%p723_p0)
}
  0x4d   : > { %599 = dma.hbm_to_vmem [thread:$0]  (!%p893_p13), %s198_s29, 256, %s200_s1, %s905_s9  }
  0x4e   : > { %208 = sbr.rel (%p930_p2) target bundleno = 625 (0x271), region = 32  ;;  %s967_s25 = sand.u32 (!%p930_p2), 1, %s804_s13  }
  0x4f   : > { %s567_s8 = sshll.u32 (!%p930_p2), %s967_s25, 5  ;;  %s211_s0 = scalar_lea.sflag (!%p930_p2), [#allocation3], %s967_s25 }
  0x50   : > { %s214_s4 = scalar_lea.vmem (!%p930_p2), [#allocation2], %s567_s8 }
  0x53   : > { %787 = dma.done.wait (%p875_p6), %s211_s0, 512  }
  0x54   : > { %789 = vsyncadd (%p875_p6), %s211_s0, 4294966784  ;;  %s220_s26 = sand.u32 1, %s857_s16   ;;  %s977_s9 = sshll.u32 %s967_s25, 4 }
  0x55   : > { %s221_s17 = scalar_lea.sflag [#allocation6], %s220_s26  ;;  %s224_s29 = scalar_lea.vmem [#allocation5], %s977_s9 }
  0x56   : > { %791 = dma.done.wait (%p875_p6), %s221_s17, 512  }
  0x57   : > { %793 = vsyncadd (%p875_p6), %s221_s17, 4294966784  ;;  %v270_v0 = vld [vmem:[%s214_s4 + $0x10] sm:$0xff]  ;;  %v271_v1 = vld [vmem:[%s214_s4 + $0x18] sm:$0xff]  ;;  %vm314_vm0 = vcmask 130048   ;;  %s234_s22 = scalar_lea.vmem [#allocation7], %s977_s9  ;;  %s581_s27 = sshll.u32 %s857_s16, 4 }
  0x58   : > { %288 = vmatpush.xpose.msra.mxu0 %v270_v0  ;;  %308 = vmatpush.xpose.msra.mxu1 %v271_v1  ;;  %v268_v2 = vld [vmem:[%s214_s4] sm:$0xff]  ;;  %v269_v3 = vld [vmem:[%s214_s4 + $0x8] sm:$0xff]  ;;  %s436_s30 = scalar_lea.hbm %s1026_s3, %s581_s27  ;;  %s267_s7 = scalar_lea.vmem [#allocation8], %s977_s9 }
  0x59   : > { %356 = vmatpush.msra.mxu2 %v270_v0  ;;  %376 = vmatpush.msra.mxu3 %v271_v1  ;;  %v272_v4 = vld [vmem:[%s224_s29] sm:$0xff]  ;;  %v273_v5 = vld [vmem:[%s224_s29 + $0x8] sm:$0xff]  ;;  %s438_s1 = sshll.u32 %s267_s7, 4  ;;  %s440_s21 = sshll.u32 %s436_s30, 4  ;;  %s439_s1 = int_to_ptr.vmem [resolvable:$true] %s438_s1  ;;  %s441_s21 = int_to_ptr.hbm [resolvable:$true] %s440_s21 }
  0x5a   : > { %v382_v27 = vld [vmem:[%s234_s22] sm:$0xff]  ;;  %v383_v28 = vld [vmem:[%s234_s22 + $0x8] sm:$0xff]  ;;  %s425_s16 = scalar_lea.sflag [#allocation4], %s967_s25  ;;  %s756_s11 = sshra.s32 %s441_s21, 4  ;;  %s757_s11 = int_to_ptr.hbm [resolvable:$true] %s756_s11 }
  0x5b   : > { %357 = vmatpush.msra.mxu2 %v268_v2  ;;  %377 = vmatpush.msra.mxu3 %v269_v3  ;;  %v384_v29 = vsub.f32 0.0, %v382_v27  ;;  %v385_v30 = vsub.f32 0.0, %v383_v28  ;;  %s758_s28 = scalar_lea.hbm %s757_s11, 16  ;;  %s762_s10 = scalar_lea.hbm %s1026_s3, 32 }
  0x5c   : > { %289 = vmatpush.xpose.msra.mxu0 %v268_v2  ;;  %309 = vmatpush.xpose.msra.mxu1 %v269_v3  ;;  %p759_p6 = scmp.ne.s32.totalorder %s757_s11, %s758_s28  ;;  %p763_p2 = scmp.lt.s32.totalorder %s757_s11, %s1026_s3 }
  0x5d   : > { %v386_v31 = vmul.f32 1.442695, %v384_v29  ;;  %v388_v32 = vmul.f32 1.442695, %v385_v30  ;;  %p764_p3 = scmp.lt.s32.totalorder %s762_s10, %s758_s28 }
  0x5e   : > { %p760_p13 = pnand %p759_p6, %p882_p11 }
  0x5f   : > { %290 = vmatmul.f32.vlgmr.msra.gmra.mxu0 %v272_v4  ;;  %310 = vmatmul.f32.vlgmr.msra.gmra.mxu1 %v273_v5  ;;  %p765_p4 = por %p764_p3, %p763_p2 }
  0x60   : > { %p761_p1 = pneg %p760_p13 }
  0x62   : > { %p766_p5 = pnand %p765_p4, %p761_p1 }
  0xdc   : > { %v291_v6 = vpop.f32.mrf.mxu0  ;;  %v311_v7 = vpop.f32.mrf.mxu1 }
  0xdd   : > { %v312_v8 = vadd.f32 %v311_v7, %v291_v6 }
  0xdf   : > { %v315_v9 = vsel %vm314_vm0, %v312_v8, inf }
  0xe0   : > { %316 = vmin.xlane.f32.xlu0 %v315_v9 }
 0x153   : > { %v317_v10 = vpop.xlane.xlu0 %316 }
 0x154   : > { %v318_v11 = vsub.f32 %v317_v10, %v312_v8 }
 0x156   : > { %v319_v12 = vmul.f32 1.442695, %v318_v11 }
 0x158   : > { %640 = vpow2.f32 %v319_v12 }
 0x15e   : > { %v641_v13 = vpop.eup %640 }
 0x15f   : > { %v321_v14 = vsel %vm314_vm0, %v641_v13, 0.0 }
 0x160   : > { %322 = vadd.xlane.f32.xlu0 %v321_v14 }
 0x1d3   : > { %v323_v15 = vpop.xlane.xlu0 %322 }
 0x1d4   : > { %642 = vrcp.f32 %v323_v15  ;;  %v335_v19 = vand.u32 2147483648, %v323_v15  ;;  %v333_v21 = vand.u32 2147483647, %v323_v15  ;;  %vm329_vm2 = vweird.f32 %v323_v15 }
 0x1d5   : > { %644 = vpow2.f32 %v386_v31 }
 0x1d6   : > { %v336_v23 = vor.u32 1.1754944e-38, %v335_v19  ;;  %vm334_vm4 = vcmp.eq.f32.partialorder %v333_v21, 8.507059e+37  ;;  %646 = vpow2.f32 %v388_v32 }
 0x1da   : > { %v643_v16 = vpop.eup %642 }
 0x1db   : > { %v325_v17 = vmul.f32 %v643_v16, %v323_v15  ;;  %vm330_vm1 = vweird.f32 %v643_v16  ;;  %v645_v33 = vpop.eup %644 }
 0x1dc   : > { %vm331_vm3 = vmor %vm329_vm2, %vm330_vm1  ;;  %v647_v34 = vpop.eup %646  ;;  %v390_v35 = vadd.f32 1.0, %v645_v33 }
 0x1dd   : > { %v326_v18 = vsub.f32 1.0, %v325_v17  ;;  %v391_v36 = vadd.f32 1.0, %v647_v34 }
 0x1de   : > { %648 = vrcp.f32 %v390_v35  ;;  %vm397_vm5 = vweird.f32 %v390_v35  ;;  %v403_v45 = vand.u32 2147483648, %v390_v35  ;;  %v401_v48 = vand.u32 2147483647, %v390_v35 }
 0x1df   : > { %v327_v20 = vmul.f32 %v643_v16, %v326_v18  ;;  %650 = vrcp.f32 %v391_v36  ;;  %vm411_vm7 = vweird.f32 %v391_v36  ;;  %v417_v46 = vand.u32 2147483648, %v391_v36 }
 0x1e0   : > { %v415_v50 = vand.u32 2147483647, %v391_v36  ;;  %v404_v51 = vor.u32 1.1754944e-38, %v403_v45  ;;  %vm402_vm11 = vcmp.eq.f32.partialorder %v401_v48, 8.507059e+37 }
 0x1e1   : > { %v328_v22 = vadd.f32 %v643_v16, %v327_v20  ;;  %v418_v52 = vor.u32 1.1754944e-38, %v417_v46 }
 0x1e2   : > { %vm416_vm12 = vcmp.eq.f32.partialorder %v415_v50, 8.507059e+37 }
 0x1e3   : > { %v332_v24 = vsel %vm331_vm3, %v643_v16, %v328_v22 }
 0x1e4   : > { %v337_v25 = vsel %vm334_vm4, %v336_v23, %v332_v24  ;;  %v649_v37 = vpop.eup %648 }
 0x1e5   : > { %v338_v26 = vmul.f32 %v641_v13, %v337_v25  ;;  %v651_v38 = vpop.eup %650  ;;  %v393_v39 = vmul.f32 %v649_v37, %v390_v35  ;;  %vm398_vm6 = vweird.f32 %v649_v37 }
 0x1e6   : > { %v407_v40 = vmul.f32 %v651_v38, %v391_v36  ;;  %vm412_vm8 = vweird.f32 %v651_v38  ;;  %vm399_vm9 = vmor %vm397_vm5, %vm398_vm6 }
 0x1e7   : > { %571 = vmatmul.msk.f32.vlgmr.msra.gmra.mxu2 %vm314_vm0, %v338_v26  ;;  %572 = vmatmul.msk.f32.vlgmr.msra.gmra.mxu3 %vm314_vm0, %v338_v26  ;;  %v394_v41 = vsub.f32 1.0, %v393_v39  ;;  %vm413_vm10 = vmor %vm411_vm7, %vm412_vm8 }
 0x1e8   : > { %v408_v42 = vsub.f32 1.0, %v407_v40 }
 0x1e9   : > { %v395_v43 = vmul.f32 %v649_v37, %v394_v41 }
 0x1ea   : > { %v409_v44 = vmul.f32 %v651_v38, %v408_v42 }
 0x1eb   : > { %v396_v47 = vadd.f32 %v649_v37, %v395_v43 }
 0x1ec   : > { %v410_v49 = vadd.f32 %v651_v38, %v409_v44 }
 0x1ed   : > { %v400_v53 = vsel %vm399_vm9, %v649_v37, %v396_v47 }
 0x1ee   : > { %v414_v54 = vsel %vm413_vm10, %v651_v38, %v410_v49  ;;  %v405_v55 = vsel %vm402_vm11, %v404_v51, %v400_v53 }
 0x1ef   : > { %v419_v56 = vsel %vm416_vm12, %v418_v52, %v414_v54 }
 0x26a   : > { %v359_v57 = vpop.f32.mrf.mxu2  ;;  %v379_v58 = vpop.f32.mrf.mxu3 }
 0x26b   : > { %v420_v59 = vmul.f32 %v405_v55, %v359_v57  ;;  %v421_v60 = vmul.f32 %v419_v56, %v379_v58 }
 0x26d   : > { %422 = vst [vmem:[%s267_s7] sm:$0xff] %v420_v59 }
 0x26e   : > { %423 = vst [vmem:[%s267_s7 + $0x8] sm:$0xff] %v421_v60 }
 0x26f   : > { %769 = shalt.err (!%p766_p5)
}
 0x270   : > { %588 = dma.vmem_to_hbm [thread:$0]  (%p882_p11), %s439_s1, 256, %s441_s21, %s425_s16  }
 0x271 PF: > { %s452_s25 = sand.u32 1, %s800_s12   ;;  %p601_p7 = pnand %p556_p9, %p886_p12 }
 0x272   : > { %s453_s4 = scalar_lea.sflag [#allocation4], %s452_s25 }
 0x273   : > { %p602_p8 = pneg %p601_p7 }
 0x275   : > { %795 = dma.done.wait (%p602_p8), %s453_s4, 256  }
 0x276   : > { %797 = vsyncadd (%p602_p8), %s453_s4, 4294967040  ;;  %s1039_s26 = sld [smem:[#allocation12_spill]]  ;;  %p19_p10 = scmp.ge.s32.totalorder %s861_s18, 4  }
 0x277   : > { %s1040_s12 = smov %s804_s13  ;;  %s1041_s13 = smov %s808_s14 }
 0x278   : > { %s1043_s15 = smov %s861_s18  ;;  %21 = sbr.rel (!%p19_p10) target bundleno = 10 (0xa), region = 101 }
 0x27c   : > { %s1042_s14 = smov %s1039_s26 }
 0x27d   :  { %459 = vsyncpa [#allocation3], 1 }
 0x27e   :  { %461 = vsyncpa [#allocation3 + $0x1], 1 }
 0x27f   :  { %462 = vsyncpa [#allocation6], 1 }
 0x280   :  { %464 = vsyncpa [#allocation6 + $0x1], 1 }
 0x281   :  { %465 = vsyncpa [#allocation4], 1 }
 0x282   :  { %467 = vsyncpa [#allocation4 + $0x1], 1 }

</bundles_post_ra>
